<compile_context>
chip_gen: v7x
topology: tpu7x:2x2x1
jax: 0.10.0
libtpu: 0.0.40
codegen_flags: <defaults>
</compile_context>

<pallas_src>
import jax
import jax.numpy as jnp
from jax.experimental import pallas as pl
from jax.experimental.pallas import tpu as pltpu


def attention_kernel(proj_s_ref, enc_ref, wa_e_ref, v_ref, out_ref):
    # proj_s_ref: (TB, 2H)    f32   mean(s,0) @ Wa[:, :2H].T (hoisted to wrapper)
    # enc_ref:    (TB, L, 2H) f32   encoder outputs, original dtype (no copy)
    # wa_e_ref:   (2H, 2H)    bf16  Wa[:, 2H:].T
    # v_ref:      (1, 2H)     f32   v weight
    # out_ref:    (TB, L)     f32   softmax attention weights
    tb, sl, d2 = enc_ref.shape

    # cat((s_mean, enc), -1) @ Wa.T == s_mean @ Wa_s.T + enc @ Wa_e.T  (exact
    # split of the concatenated Linear).  Flatten (TB, L, 2H) -> (TB*L, 2H) so
    # the projection is a single MXU GEMM per tile; the bf16 cast happens here
    # (free VPU op) instead of as a wrapper-side HBM copy.
    enc_flat = enc_ref[...].reshape(tb * sl, d2).astype(jnp.bfloat16)
    proj_e = jnp.dot(enc_flat, wa_e_ref[...],
                     preferred_element_type=jnp.float32)              # (TB*L, 2H)

    # add the per-batch hoisted projection, tanh in f32 (EUP)
    e_act = jnp.tanh(proj_e.reshape(tb, sl, d2)
                     + proj_s_ref[...][:, None, :])                   # (TB, L, 2H)

    # v(E).squeeze(-1): weighted lane reduce over the feature axis (f32)
    scores = jnp.sum(e_act * v_ref[...][None, :, :], axis=-1)         # (TB, L)

    # numerically stable softmax over the (full, unpadded) sequence axis;
    # exact division so rows sum to 1.
    m = jnp.max(scores, axis=1, keepdims=True)
    e = jnp.exp(scores - m)
    out_ref[...] = e / jnp.sum(e, axis=1, keepdims=True)


def _pick_batch_tile(batch, seq_len, d2, *, budget_bytes=20 << 20, min_grid=2):
    """Batch-tile size such that double-buffered enc blocks + live f32 temps fit
    a conservative VMEM budget, tiles are sublane-aligned, batch padding stays
    under one tile (balanced tiles), and the grid has >= `min_grid` steps when
    the batch allows (keeps both v7x TensorCores busy)."""
    if batch <= 8:
        return batch                              # full-dim block: always legal
    lane = pl.cdiv(d2, 128) * 128                 # minor axis pads to 128 lanes
    sub = pl.cdiv(seq_len, 8) * 8                 # second-minor pads to 8 sublanes
    # per batch row: 2x (double-buffered) enc block + ~3 live f32 temps
    bytes_per_row = 2 * sub * lane * 4 + 3 * seq_len * lane * 4
    tb_cap = max(8, (budget_bytes // bytes_per_row) // 8 * 8)
    n_tiles = max(pl.cdiv(batch, tb_cap), min(min_grid, batch // 8))
    tb = pl.cdiv(pl.cdiv(batch, n_tiles), 8) * 8
    if tb >= batch:
        return batch                              # single full-batch tile
    return tb


def attention_forward(enc_output, s, attn_w, v_w, *, tb=None):
    """enc_output: (B, L, 2H); s: (NL, B, 2H); attn_w: (2H, 4H) torch (out, in)
    layout; v_w: (1, 2H). Returns softmax attention weights (B, L) float32."""
    B, L, D2 = enc_output.shape

    # ---- tiny parameter / state prep hoisted out of the per-tile path -------
    wa_s_t = jnp.transpose(attn_w[:, :D2]).astype(jnp.float32)   # acts on s_mean
    wa_e_t = jnp.transpose(attn_w[:, D2:]).astype(jnp.bfloat16)  # acts on enc
    v_f32 = v_w.astype(jnp.float32)                              # (1, 2H)
    s_mean = jnp.mean(s.astype(jnp.float32), axis=0)             # (B, 2H)
    proj_s = jnp.dot(s_mean, wa_s_t)                             # (B, 2H) f32

    # ---- batch tiling (no copies of enc in the common, divisible case) ------
    if tb is None:
        tb = _pick_batch_tile(B, L, D2)
    grid = pl.cdiv(B, tb)
    Bp = grid * tb
    enc_in, proj_s_in = enc_output, proj_s
    if Bp != B:  # balanced tiles keep this pad under one tile's worth of rows
        enc_in = jnp.pad(enc_in, ((0, Bp - B), (0, 0), (0, 0)))
        proj_s_in = jnp.pad(proj_s_in, ((0, Bp - B), (0, 0)))

    # ---- real VMEM footprint (lane pad to 128, sublane pad to 8) ------------
    lane = pl.cdiv(D2, 128) * 128
    subl = pl.cdiv(L, 8) * 8
    enc_elem = enc_in.dtype.itemsize
    footprint = (2 * tb * subl * lane * enc_elem            # enc blocks (x2 buffers)
                 + 3 * tb * L * lane * 4                    # live f32 temps
                 + 2 * (pl.cdiv(tb, 8) * 8) * (pl.cdiv(L, 128) * 128) * 4   # out
                 + 2 * (pl.cdiv(tb, 8) * 8) * lane * 4      # proj_s blocks
                 + 4 * lane * lane)                         # resident weights
    # enough headroom over the footprint, but never above v7x's 64 MiB physical
    vmem_limit = int(min(64 << 20, max(32 << 20, 2 * footprint)))

    out = pl.pallas_call(
        attention_kernel,
        out_shape=jax.ShapeDtypeStruct((Bp, L), jnp.float32),
        grid_spec=pltpu.PrefetchScalarGridSpec(
            num_scalar_prefetch=0,
            grid=(grid,),
            in_specs=[
                pl.BlockSpec((tb, D2), lambda i: (i, 0)),        # proj_s
                pl.BlockSpec((tb, L, D2), lambda i: (i, 0, 0)),  # enc (orig dtype)
                pl.BlockSpec((D2, D2), lambda i: (0, 0)),        # Wa_e.T (bf16)
                pl.BlockSpec((1, D2), lambda i: (0, 0)),         # v (f32)
            ],
            out_specs=pl.BlockSpec((tb, L), lambda i: (i, 0)),
        ),
        compiler_params=pltpu.CompilerParams(
            dimension_semantics=("parallel",),
            vmem_limit_bytes=vmem_limit,
        ),
    )(proj_s_in, enc_in, wa_e_t, v_f32)

    return out[:B] if Bp != B else out


def attention_ref(enc_output, s, attn_w, v_w):
    """Pure-JAX f32 reference mirroring the PyTorch forward."""
    B, L, _ = enc_output.shape
    s_attn = jnp.mean(jnp.repeat(s[:, :, None, :], L, axis=2), axis=0)   # (B, L, 2H)
    x = jnp.concatenate([s_attn, enc_output], axis=2)                    # (B, L, 4H)
    E = jnp.tanh(jnp.einsum('bli,oi->blo', x, attn_w))                   # (B, L, 2H)
    scores = jnp.einsum('blo,ko->blk', E, v_w)[..., 0]                   # (B, L)
    return jax.nn.softmax(scores, axis=1)


if __name__ == "__main__":
    hid_dim = 16
    H2, H4 = 2 * hid_dim, 4 * hid_dim
    B, L, NUM_LAYERS = 16, 8, 2

    key = jax.random.PRNGKey(0)
    k_enc, k_s, k_wa, k_v = jax.random.split(key, 4)

    enc_output = jax.random.normal(k_enc, (B, L, H2), dtype=jnp.float32)
    s = jax.random.normal(k_s, (NUM_LAYERS, B, H2), dtype=jnp.float32)

    # deterministic synthetic parameters (torch nn.Linear weight layout: (out, in))
    attn_w = jax.random.normal(k_wa, (H2, H4), dtype=jnp.float32) * 0.1
    v_w = jax.random.normal(k_v, (1, H2), dtype=jnp.float32) * 0.1

    # auto tile -> tb=8, a 2-step batch grid (exercises the pipelined path and
    # the dual-TC-friendly grid>=2 policy).
    out = attention_forward(enc_output, s, attn_w, v_w)
    out = jax.block_until_ready(out)

    ref = attention_ref(enc_output, s, attn_w, v_w)
    assert out.shape == (B, L)
    max_err = float(jnp.max(jnp.abs(out - ref)))
    assert jnp.allclose(out, ref, atol=5e-3, rtol=5e-2), (
        f"mismatch vs reference (max abs err {max_err})")
    # exact softmax normalization in the kernel -> tight row-sum check
    assert jnp.allclose(jnp.sum(out, axis=1), 1.0, atol=1e-4)

    print("KERNEL_OK")
</pallas_src>

<mosaic_0001>
module attributes {stable_mosaic.version = 11 : i64} {
  func.func @attention_kernel(%arg0: i32, %arg1: memref<8x32xf32, #tpu.memory_space<vmem>>, %arg2: memref<8x8x32xf32, #tpu.memory_space<vmem>>, %arg3: memref<32x32xbf16, #tpu.memory_space<vmem>>, %arg4: memref<1x32xf32, #tpu.memory_space<vmem>>, %arg5: memref<8x8xf32, #tpu.memory_space<vmem>>) attributes {dimension_semantics = [#tpu.dimension_semantics<parallel>], iteration_bounds = array<i64: 2>, scalar_prefetch = 0 : i64, scratch_operands = 0 : i64, tpu.core_type = #tpu.core_type<tc>, window_params = [{transform_indices = @transform_0, window_bounds = array<i64: 8, 32>}, {transform_indices = @transform_1, window_bounds = array<i64: 8, 8, 32>}, {pipeline_mode = #tpu.pipeline_mode<synchronous>, transform_indices = @transform_2, window_bounds = array<i64: 32, 32>}, {pipeline_mode = #tpu.pipeline_mode<synchronous>, transform_indices = @transform_3, window_bounds = array<i64: 1, 32>}, {transform_indices = @transform_4, window_bounds = array<i64: 8, 8>}]} {
    %c0 = arith.constant 0 : index
    %c0_0 = arith.constant 0 : index
    %c0_1 = arith.constant 0 : index
    %0 = vector.load %arg2[%c0, %c0_0, %c0_1] : memref<8x8x32xf32, #tpu.memory_space<vmem>>, vector<8x8x32xf32>
    %1 = vector.shape_cast %0 : vector<8x8x32xf32> to vector<64x32xf32>
    %2 = arith.truncf %1 : vector<64x32xf32> to vector<64x32xbf16>
    %c0_2 = arith.constant 0 : index
    %c0_3 = arith.constant 0 : index
    %3 = vector.load %arg3[%c0_2, %c0_3] : memref<32x32xbf16, #tpu.memory_space<vmem>>, vector<32x32xbf16>
    %cst = arith.constant dense<0.000000e+00> : vector<64x32xf32>
    %4 = tpu.matmul %2, %3, %cst {dimension_numbers = #tpu.dot_dimension_numbers<[1], [0], [0], [1], [0, 0, 1, 1], [], []>} : vector<64x32xbf16>, vector<32x32xbf16>, vector<64x32xf32> -> vector<64x32xf32>
    %5 = vector.shape_cast %4 : vector<64x32xf32> to vector<8x8x32xf32>
    %c0_4 = arith.constant 0 : index
    %c0_5 = arith.constant 0 : index
    %6 = vector.load %arg1[%c0_4, %c0_5] : memref<8x32xf32, #tpu.memory_space<vmem>>, vector<8x32xf32>
    %7 = vector.shape_cast %6 : vector<8x32xf32> to vector<8x1x32xf32>
    %8 = vector.broadcast %7 : vector<8x1x32xf32> to vector<8x8x32xf32>
    %9 = arith.addf %5, %8 : vector<8x8x32xf32>
    %10 = math.tanh %9 : vector<8x8x32xf32>
    %c0_6 = arith.constant 0 : index
    %c0_7 = arith.constant 0 : index
    %11 = vector.load %arg4[%c0_6, %c0_7] : memref<1x32xf32, #tpu.memory_space<vmem>>, vector<1x32xf32>
    %12 = vector.shape_cast %11 : vector<1x32xf32> to vector<1x1x32xf32>
    %13 = vector.broadcast %12 : vector<1x1x32xf32> to vector<8x8x32xf32>
    %14 = arith.mulf %10, %13 : vector<8x8x32xf32>
    %cst_8 = arith.constant dense<0.000000e+00> : vector<8x8xf32>
    %15 = vector.multi_reduction <add>, %14, %cst_8 [2] : vector<8x8x32xf32> to vector<8x8xf32>
    %cst_9 = arith.constant dense<0xFF800000> : vector<8xf32>
    %16 = vector.multi_reduction <maximumf>, %15, %cst_9 [1] : vector<8x8xf32> to vector<8xf32>
    %17 = vector.shape_cast %16 : vector<8xf32> to vector<8x1xf32>
    %18 = vector.broadcast %17 : vector<8x1xf32> to vector<8x8xf32>
    %19 = arith.subf %15, %18 : vector<8x8xf32>
    %20 = math.exp %19 : vector<8x8xf32>
    %cst_10 = arith.constant dense<0.000000e+00> : vector<8xf32>
    %21 = vector.multi_reduction <add>, %20, %cst_10 [1] : vector<8x8xf32> to vector<8xf32>
    %22 = vector.shape_cast %21 : vector<8xf32> to vector<8x1xf32>
    %23 = vector.broadcast %22 : vector<8x1xf32> to vector<8x8xf32>
    %24 = arith.divf %20, %23 : vector<8x8xf32>
    %c0_11 = arith.constant 0 : index
    %c0_12 = arith.constant 0 : index
    %25 = vector.load %arg5[%c0_11, %c0_12] : memref<8x8xf32, #tpu.memory_space<vmem>>, vector<8x8xf32>
    tpu.vector_store %arg5[%c0_11, %c0_12], %24 {strides = array<i32>} : memref<8x8xf32, #tpu.memory_space<vmem>>, vector<8x8xf32>,
    return
  }
  func.func @transform_0(%arg0: i32) -> (i32, i32) {
    %c0_i32 = arith.constant 0 : i32
    %c0_i32_0 = arith.constant 0 : i32
    return %arg0, %c0_i32 : i32, i32
  }
  func.func @transform_1(%arg0: i32) -> (i32, i32, i32) {
    %c0_i32 = arith.constant 0 : i32
    %c0_i32_0 = arith.constant 0 : i32
    %c0_i32_1 = arith.constant 0 : i32
    return %arg0, %c0_i32, %c0_i32_0 : i32, i32, i32
  }
  func.func @transform_2(%arg0: i32) -> (i32, i32) {
    %c0_i32 = arith.constant 0 : i32
    %c0_i32_0 = arith.constant 0 : i32
    %c0_i32_1 = arith.constant 0 : i32
    return %c0_i32, %c0_i32_0 : i32, i32
  }
  func.func @transform_3(%arg0: i32) -> (i32, i32) {
    %c0_i32 = arith.constant 0 : i32
    %c0_i32_0 = arith.constant 0 : i32
    %c0_i32_1 = arith.constant 0 : i32
    return %c0_i32, %c0_i32_0 : i32, i32
  }
  func.func @transform_4(%arg0: i32) -> (i32, i32) {
    %c0_i32 = arith.constant 0 : i32
    %c0_i32_0 = arith.constant 0 : i32
    return %arg0, %c0_i32 : i32, i32
  }
}

</mosaic_0001>

<bundles_post_ra>
// kernel: tpu_custom_call.1
= control target key start
LH: loop header
LB: loop body
LE: loop exit
PB: predicated region body
PF: predicated region fallthrough
CT: control target
= control target key end

     0   :  { %9 = vsyncpa [#allocation3], 0  ;;  %s1617_s0 = inlined_call_operand.hbm [shape: f32[16,32], index: 0, kind: input, shape index: {}]   ;;  %s1618_s1 = inlined_call_operand.hbm [shape: f32[16,8,32], index: 1, kind: input, shape index: {}]   ;;  %s1619_s2 = inlined_call_operand.hbm [shape: bf16[32,32], index: 2, kind: input, shape index: {}]   ;;  %s1620_s3 = inlined_call_operand.vmem [shape: f32[1,32], index: 3, kind: input, shape index: {}]   ;;  %s1621_s4 = inlined_call_operand.vmem [shape: f32[16,8], index: 4, kind: output, shape index: {}]  }
   0x1   :  { %11 = vsyncpa [#allocation3 + $0x1], 0 }
   0x2   :  { %12 = vsyncpa [#allocation5], 0 }
   0x3   :  { %14 = vsyncpa [#allocation5 + $0x1], 0  ;;  %s1275_s15 = smov 0   ;;  %s1277_s16 = smov 0  }
   0x4   :  { %s1279_s17 = smov 0   ;;  %s1281_s18 = smov 0  }
   0x5 LB: > { %s1294_s19 = sadd.s32 4294967295, %s1239_s18   ;;  %p40_p0 = scmp.ne.s32.totalorder %s1231_s16, %s1227_s15  ;;  %s1239_s18 = sphi %s1281_s18, %s1636_s18   ;;  %s1235_s17 = sphi %s1279_s17, %s1635_s17   ;;  %s1231_s16 = sphi %s1277_s16, %s1634_s16   ;;  %s1227_s15 = sphi %s1275_s15, %s1633_s15  }
   0x6   : > { %p1622_p1 = scmp.eq.s32.totalorder %s1294_s19, 0  ;;  %p950_p2 = scmp.ge.s32.totalorder %s1239_s18, 1 }
   0x7   : > { %p145_p3 = scmp.lt.s32.totalorder %s1239_s18, 3  ;;  %s1241_s22 = smov [#allocation6]  }
   0x8   : > { %p1302_p4 = por %p1622_p1, %p40_p0  ;;  %s157_s23 = sshll.u32 %s1241_s22, 4  ;;  %s158_s23 = int_to_ptr.vmem [resolvable:$true] %s157_s23 }
   0x9   : > { %p1306_p5 = pnand %p950_p2, %p145_p3  ;;  %s1319_s25 = sadd.s32 1, %s1239_s18  }
   0xa   : > { %s1625_s20 = scalar_select %p1302_p4, 1, 0 }
   0xb   : > { %s1626_s21 = scalar_select %p1306_p5, 1, 0 }
   0xc   : > { %p1003_p6 = pneg %p1306_p5  ;;  %s27_s26 = sadd.s32 1, %s1235_s17 }
   0xd   : > { %s24_s27 = ssub.s32 %s1239_s18, %s1319_s25  ;;  %s1109_s30 = scalar_lea.hbm %s1619_s2, 256 }
   0xe   : > { %p1314_p7 = pnand %p1003_p6, %p1622_p1  ;;  %p1110_p8 = scmp.ne.s32.totalorder %s1619_s2, %s1109_s30 }
   0xf   : > { %p1116_p12 = scmp.lt.u32.totalorder %s1109_s30, %s1619_s2 }
  0x10   : > { %p1111_p9 = pneg %p1314_p7 }
  0x12   : > { %p1112_p10 = pnand %p1111_p9, %p1110_p8 }
  0x14   : > { %p1113_p11 = pneg %p1112_p10 }
  0x16   : > { %p1118_p13 = pnand %p1116_p12, %p1113_p11 }
  0x18   : > { %1121 = shalt.err (!%p1118_p13)
}
  0x19   : > { %s1122_s9 = scalar_lea.vmem %s158_s23, 256  ;;  %p1130_p6 = scmp.lt.s32.totalorder %s158_s23, %s158_s23 }
  0x1a   : > { %p1123_p0 = scmp.ne.s32.totalorder %s158_s23, %s1122_s9  ;;  %p1131_p1 = scmp.lt.s32.totalorder %s1122_s9, %s1122_s9 }
  0x1c   : > { %p1125_p2 = pnand %p1123_p0, %p1111_p9  ;;  %p1132_p4 = por %p1131_p1, %p1130_p6 }
  0x1e   : > { %p1126_p3 = pneg %p1125_p2 }
  0x20   : > { %p1133_p5 = pnand %p1132_p4, %p1126_p3 }
  0x22   : > { %1136 = shalt.err (!%p1133_p5)
}
  0x23   : > { %s1242_s10 = smov 64   ;;  %s1243_s11 = smov 4  }
  0x24   : > { %1006 = dma.hbm_to_vmem [thread:$0]  (!%p1314_p7), %s1619_s2, 256, %s158_s23, [#allocation5], %s1242_s10, %s1242_s10, %s1243_s11  }
  0x25   : > { %p25_p8 = scmp.eq.s32.totalorder %s24_s27, 0  ;;  %p34_p1 = scmp.ne.s32.totalorder %s1235_s17, %s1231_s16 }
  0x26   : > { %p35_p4 = scmp.eq.s32.totalorder %s1239_s18, 0  ;;  %p1015_p5 = scmp.lt.s32.totalorder %s1239_s18, 2 }
  0x27   : > { %s1345_s14 = scalar_select %p25_p8, %s1235_s17, %s27_s26  }
  0x28   : > { %p36_p9 = por %p35_p4, %p34_p1  ;;  %s1348_s15 = sand.u32 1, %s1235_s17  }
  0x29   : > { %s953_s22 = sshll.u32 %s1348_s15, 3  ;;  %s954_s28 = sshll.u32 %s1239_s18, 7 }
  0x2a   : > { %s1355_s30 = scalar_lea.hbm %s1617_s0, %s954_s28  ;;  %s178_s23 = scalar_lea.vmem [#allocation2], %s953_s22 }
  0x2b   : > { %s185_s26 = sshll.u32 %s178_s23, 4  ;;  %p1359_p7 = pnand %p1015_p5, %p36_p9  ;;  %s1357_s26 = int_to_ptr.vmem [resolvable:$true] %s185_s26 }
  0x2c   : > { %s955_s5 = sshll.u32 %s1348_s15, 6  ;;  %s192_s6 = sand.u32 1, %s1239_s18  }
  0x2d   : > { %s175_s7 = scalar_lea.sflag [#allocation3], %s1348_s15  ;;  %s1137_s8 = scalar_lea.hbm %s1355_s30, 128 }
  0x2e   : > { %p1138_p10 = scmp.ne.s32.totalorder %s1355_s30, %s1137_s8  ;;  %p1139_p11 = pneg %p1359_p7 }
  0x2f   : > { %s1142_s11 = scalar_lea.hbm %s1617_s0, 256  ;;  %p1143_p0 = scmp.lt.u32.totalorder %s1355_s30, %s1617_s0 }
  0x30   : > { %p1140_p12 = pnand %p1139_p11, %p1138_p10  ;;  %p1144_p2 = scmp.lt.u32.totalorder %s1142_s11, %s1137_s8 }
  0x31   : > { %p1146_p6 = scmp.lt.u32.totalorder %s1137_s8, %s1355_s30 }
  0x32   : > { %p1141_p13 = pneg %p1140_p12  ;;  %p1145_p3 = por %p1144_p2, %p1143_p0 }
  0x34   : > { %p1147_p8 = por %p1146_p6, %p1145_p3 }
  0x36   : > { %p1148_p1 = pnand %p1147_p8, %p1141_p13 }
  0x38   : > { %1151 = shalt.err (!%p1148_p1)
}
  0x39   : > { %s1152_s22 = scalar_lea.vmem %s1357_s26, 128  ;;  %s1244_s28 = smov [#allocation2]  }
  0x3a   : > { %p1153_p4 = scmp.ne.s32.totalorder %s1357_s26, %s1152_s22  ;;  %s1157_s24 = sshll.u32 %s1244_s28, 4  ;;  %s1158_s24 = int_to_ptr.vmem [resolvable:$false] %s1157_s24 }
  0x3b   : > { %s1159_s29 = scalar_lea.vmem %s1158_s24, 256  ;;  %p1160_p10 = scmp.lt.s32.totalorder %s1357_s26, %s1158_s24 }
  0x3c   : > { %p1155_p5 = pnand %p1153_p4, %p1139_p11  ;;  %p1161_p12 = scmp.lt.s32.totalorder %s1159_s29, %s1152_s22 }
  0x3e   : > { %p1156_p9 = pneg %p1155_p5  ;;  %p1162_p0 = por %p1161_p12, %p1160_p10 }
  0x40   : > { %p1163_p2 = pnand %p1162_p0, %p1156_p9 }
  0x42   : > { %1166 = shalt.err (!%p1163_p2)
}
  0x43   : > { %1010 = dma.hbm_to_vmem [thread:$0]  (!%p1359_p7), %s1355_s30, 128, %s1357_s26, %s175_s7  }
  0x44   : > { %s196_s23 = scalar_lea.vmem [#allocation4], %s955_s5  ;;  %s972_s9 = sshll.u32 %s1239_s18, 10 }
  0x45   : > { %s203_s8 = sshll.u32 %s196_s23, 4  ;;  %s1399_s12 = scalar_lea.hbm %s1618_s1, %s972_s9  ;;  %s1393_s8 = int_to_ptr.vmem [resolvable:$true] %s203_s8 }
  0x46   : > { %s1403_s13 = scalar_lea.sflag [#allocation5], %s192_s6  ;;  %s1167_s22 = scalar_lea.hbm %s1399_s12, 1024 }
  0x47   : > { %p1168_p13 = scmp.ne.s32.totalorder %s1399_s12, %s1167_s22  ;;  %s1172_s26 = scalar_lea.hbm %s1618_s1, 2048 }
  0x48   : > { %p1173_p8 = scmp.lt.u32.totalorder %s1399_s12, %s1618_s1  ;;  %p1174_p1 = scmp.lt.u32.totalorder %s1172_s26, %s1167_s22 }
  0x49   : > { %p1170_p3 = pnand %p1168_p13, %p1139_p11  ;;  %p1176_p5 = scmp.lt.u32.totalorder %s1167_s22, %s1399_s12 }
  0x4a   : > { %p1175_p4 = por %p1174_p1, %p1173_p8 }
  0x4b   : > { %p1171_p6 = pneg %p1170_p3 }
  0x4c   : > { %p1177_p9 = por %p1176_p5, %p1175_p4 }
  0x4e   : > { %p1178_p10 = pnand %p1177_p9, %p1171_p6 }
  0x50   : > { %1181 = shalt.err (!%p1178_p10)
}
  0x51   : > { %s1182_s18 = scalar_lea.vmem %s1393_s8, 1024  ;;  %s1245_s6 = smov [#allocation4]  }
  0x52   : > { %p1183_p12 = scmp.ne.s32.totalorder %s1393_s8, %s1182_s18  ;;  %s1187_s28 = sshll.u32 %s1245_s6, 4  ;;  %s1188_s28 = int_to_ptr.vmem [resolvable:$false] %s1187_s28 }
  0x53   : > { %s1189_s24 = scalar_lea.vmem %s1188_s28, 2048  ;;  %p1190_p13 = scmp.lt.s32.totalorder %s1393_s8, %s1188_s28 }
  0x54   : > { %p1185_p0 = pnand %p1183_p12, %p1139_p11  ;;  %p1191_p3 = scmp.lt.s32.totalorder %s1189_s24, %s1182_s18 }
  0x56   : > { %p1186_p2 = pneg %p1185_p0  ;;  %p1192_p8 = por %p1191_p3, %p1190_p13 }
  0x58   : > { %p1193_p1 = pnand %p1192_p8, %p1186_p2 }
  0x5a   : > { %1196 = shalt.err (!%p1193_p1)
}
  0x5b   : > { %s1246_s29 = smov 128   ;;  %s1247_s23 = smov 8  }
  0x5c   : > { %1013 = dma.hbm_to_vmem [thread:$0]  (!%p1359_p7), %s1399_s12, 1024, %s1393_s8, %s1403_s13, %s1246_s29, %s1246_s29, %s1247_s23  }
  0x5d   : > { %p1629_p11 = scmp.ne.s32.totalorder %s1626_s21, 0 }
  0x5e   : > { %s217_s9 = sand.u32 (!%p1629_p11), 1, %s1231_s16   ;;  %p1630_p6 = scmp.ne.s32.totalorder (!%p1629_p11), %s1625_s20, 0 }
  0x5f   : > { %215 = sbr.rel (%p1629_p11) target bundleno = 1138 (0x472), region = 36  ;;  %s959_s10 = sshll.u32 (!%p1629_p11), %s217_s9, 3 }
  0x60   : > { %s218_s11 = scalar_lea.sflag (!%p1629_p11), [#allocation3], %s217_s9  ;;  %s1432_s22 = scalar_lea.vmem (!%p1629_p11), [#allocation2], %s959_s10 }
  0x66   : > { %1214 = dma.done.wait (%p1630_p6), %s218_s11, 128  }
  0x67   : > { %1216 = vsyncadd (%p1630_p6), %s218_s11, 4294967168  ;;  %s226_s15 = sand.u32 1, %s1294_s19   ;;  %s960_s27 = sshll.u32 %s217_s9, 6 }
  0x68   : > { %s227_s8 = scalar_lea.sflag [#allocation5], %s226_s15  ;;  %s230_s12 = scalar_lea.vmem [#allocation4], %s960_s27 }
  0x69   : > { %1218 = dma.done.wait (%p1630_p6), %s227_s8, 1024  }
  0x6a   : > { %1220 = vsyncadd (%p1630_p6), %s227_s8, 4294966272  ;;  %p1631_p7 = scmp.eq.s32.totalorder %s1294_s19, 0 }
  0x6c   : > { %1222 = dma.done.wait (%p1631_p7), [#allocation5], 256   ;;  %p1632_p4 = pmov %p1631_p7 }
  0x6d   : > { %v1058_v0 = vld [vmem:[#allocation6] sm:$0xff]   ;;  %v1059_v1 = vld [vmem:[#allocation6 + $0x8] sm:$0xff]   ;;  %vm297_vm0 = vcmask 261120   ;;  %v271_v4 = vld [vmem:[%s230_s12 + $0x10] sm:$0xff]  ;;  %v1248_v14 = vmov 1966171168   ;;  %v381_v16 = vlaneseq }
  0x6e   : > { %1224 = vsyncadd (%p1632_p4), [#allocation5], 4294967040  ;;  %979 = vmatprep.subr.bf16.mxu0 %v1058_v0  ;;  %991 = vmatprep.subr.bf16.mxu1 %v1058_v0  ;;  %v269_v2 = vld [vmem:[%s230_s12] sm:$0xff]  ;;  %v270_v3 = vld [vmem:[%s230_s12 + $0x8] sm:$0xff]  ;;  %v379_v15 = vunpack.c.l.s4 %v1248_v14  ;;  %vm563_vm1 = vcmask 1041409   ;;  %vm565_vm2 = vcmask 1042434  }
  0x6f   : > { %980 = vmatpush3.bf16.msra.mxu0 %v1058_v0  ;;  %993 = vmatpush3.bf16.msra.mxu1 %v1058_v0  ;;  %v277_v5 = vpack.c.bf16 %v270_v3, %v269_v2  ;;  %v272_v6 = vld [vmem:[%s230_s12 + $0x18] sm:$0xff]  ;;  %v273_v7 = vld [vmem:[%s230_s12 + $0x20] sm:$0xff]  ;;  %v274_v8 = vld [vmem:[%s230_s12 + $0x28] sm:$0xff]  ;;  %v1452_v18 = vshrl.u32 %v381_v16, 7  ;;  %vm567_vm3 = vcmask 1043459   ;;  %vm569_vm4 = vcmask 1044484  }
  0x70   : > { %981 = vmatprep.subr.bf16.mxu0 %v1059_v1  ;;  %992 = vmatprep.subr.bf16.mxu1 %v1059_v1  ;;  %v279_v9 = vpack.c.bf16 %v274_v8, %v273_v7  ;;  %v275_v10 = vld [vmem:[%s230_s12 + $0x30] sm:$0xff]  ;;  %v276_v11 = vld [vmem:[%s230_s12 + $0x38] sm:$0xff]  ;;  %v278_v12 = vpack.c.bf16 %v272_v6, %v271_v4  ;;  %v380_v17 = vunpack.c.0.s8 %v379_v15  ;;  %v969_v59 = vld [vmem:[%s1620_s3] ss:$0 sm:$0xff]  ;;  %vm571_vm5 = vcmask 1045509   ;;  %p264_p5 = scmp.lt.s32.totalorder %s1294_s19, 1 }
  0x71   : > { %983 = vmatprep.mubr.msk.bf16.mxu0 %vm297_vm0, %v277_v5  ;;  %v280_v13 = vpack.c.bf16 %v276_v11, %v275_v10  ;;  %v375_v20 = vld [vmem:[%s1432_s22] sm:$0xff]  ;;  %v1457_v29 = vsub.s32 0, %v1452_v18  ;;  %vm573_vm6 = vcmask 1046534   ;;  %vm575_vm7 = vcmask 1047559  }
  0x72   : > { %987 = vmatprep.mubr.msk.bf16.mxu1 %vm297_vm0, %v279_v9  ;;  %v383_v19 = vsub.s32 %v380_v17, %v1452_v18  ;;  %v377_v22 = vcombine.high %v375_v20, %v375_v20  ;;  %vm578_vm8 = vcmask 64512   ;;  %s1638_s19 = smov (!%p264_p5, %s1294_s19), 1 }
  0x73   : > { %982 = vmatpush3.bf16.msra.mxu0 %v1059_v1  ;;  %994 = vmatpush3.bf16.msra.mxu1 %v1059_v1  ;;  %s962_s13 = sshll.u32 %s1638_s19, 3 }
  0x74   : > { %v384_v21 = vrot.slane %v375_v20, %v383_v19  ;;  %v391_v24 = vrot.slane %v377_v22, %v383_v19  ;;  %v530_v22 = vand.u32 127, %v381_v16  ;;  %s267_s5 = scalar_lea.vmem %s1621_s4, %s962_s13 }
  0x76   : > { %984 = vmatmul.mubr.msk.bf16.vlgmr.msra.gmra.mrb[0].mxu0 %vm297_vm0, %v278_v12  ;;  %988 = vmatmul.mubr.msk.bf16.vlgmr.msra.gmra.mrb[0].mxu1 %vm297_vm0, %v280_v13  ;;  %v392_v23 = vcombine.high %v384_v21, %v384_v21  ;;  %v400_v25 = vrot.slane %v384_v21, %v383_v19  ;;  %v393_v27 = vcombine.high %v391_v24, %v391_v24 }
  0x77   : > { %v407_v32 = vrot.slane %v391_v24, %v383_v19 }
  0x78   : > { %v414_v26 = vrot.slane %v392_v23, %v383_v19  ;;  %v422_v28 = vcombine.high %v400_v25, %v400_v25  ;;  %v421_v31 = vrot.slane %v393_v27, %v383_v19  ;;  %v429_v34 = vrot.slane %v400_v25, %v1457_v29 }
  0x79   : > { %v423_v40 = vcombine.high %v407_v32, %v407_v32  ;;  %v445_v41 = vrot.slane %v407_v32, %v1457_v29  ;;  %v1480_v25 = vsub.s32 %v530_v22, %v1452_v18 }
  0x7a   : > { %v424_v30 = vcombine.high %v414_v26, %v414_v26  ;;  %v437_v33 = vrot.slane %v422_v28, %v1457_v29  ;;  %v425_v36 = vcombine.high %v421_v31, %v421_v31  ;;  %v433_v38 = vrot.slane %v414_v26, %v1457_v29 }
  0x7b   : > { %v449_v48 = vrot.slane %v421_v31, %v1457_v29  ;;  %v453_v54 = vrot.slane %v423_v40, %v1457_v29 }
  0x7c   : > { %v441_v35 = vrot.slane %v424_v30, %v1457_v29  ;;  %v457_v51 = vrot.slane %v425_v36, %v1457_v29 }
 0x149   : > { %v985_v37 = vpop.f32.mrb[0].mxu0  ;;  %v989_v39 = vpop.f32.mrb[0].mxu1 }
 0x14a   : > { %v468_v42 = vadd.f32 %v985_v37, %v437_v33  ;;  %v344_v43 = vpop.f32.mrb[1].mxu0  ;;  %v360_v44 = vpop.f32.mrb[1].mxu1  ;;  %v472_v58 = vadd.f32 %v989_v39, %v453_v54 }
 0x14b   : > { %v466_v45 = vadd.f32 %v429_v34, %v344_v43  ;;  %v986_v46 = vpop.f32.mrb[2].mxu0  ;;  %v990_v47 = vpop.f32.mrb[2].mxu1  ;;  %v470_v55 = vadd.f32 %v445_v41, %v360_v44 }
 0x14c   : > { %1061 = vtanh.f32 %v468_v42  ;;  %v469_v49 = vadd.f32 %v986_v46, %v441_v35  ;;  %v347_v50 = vpop.f32.mrb[3].mxu0  ;;  %v363_v52 = vpop.f32.mrb[3].mxu1  ;;  %v473_v57 = vadd.f32 %v990_v47, %v457_v51  ;;  %v597_v51 = vsub.s32 3, %v1452_v18 }
 0x14d   : > { %1063 = vtanh.f32 %v466_v45  ;;  %v467_v53 = vadd.f32 %v433_v38, %v347_v50  ;;  %v471_v56 = vadd.f32 %v449_v48, %v363_v52  ;;  %v1249_v48 = vmov 0  }
 0x14e   : > { %1065 = vtanh.f32 %v469_v49  ;;  %1057 = vset.pattern.permute.xlu0 %v1249_v48  ;;  %1056 = vset.pattern.permute.xlu1 %v1249_v48  ;;  %v589_v49 = vsub.s32 1, %v1452_v18  ;;  %v593_v50 = vsub.s32 2, %v1452_v18 }
 0x14f   : > { %1067 = vtanh.f32 %v467_v53 }
 0x150   : > { %1069 = vtanh.f32 %v470_v55 }
 0x151   : > { %1071 = vtanh.f32 %v471_v56  ;;  %v601_v56 = vsub.s32 4, %v1452_v18 }
 0x152   : > { %1073 = vtanh.f32 %v473_v57 }
 0x153   : > { %1075 = vtanh.f32 %v472_v58 }
 0x156   : > { %v1062_v60 = vpop.eup %1061 }
 0x157   : > { %v1064_v61 = vpop.eup %1063  ;;  %v491_v62 = vmul.f32 %v1062_v60, %v969_v59 }
 0x158   : > { %v1066_v63 = vpop.eup %1065  ;;  %v489_v0 = vmul.f32 %v1064_v61, %v969_v59 }
 0x159   : > { %v1068_v1 = vpop.eup %1067  ;;  %v503_v2 = vsel %vm297_vm0, %v491_v62, 0.0  ;;  %v492_v3 = vmul.f32 %v1066_v63, %v969_v59  ;;  %v605_v63 = vsub.s32 5, %v1452_v18 }
 0x15a   : > { %504 = vadd.xlane.f32.xlu1 %v503_v2  ;;  %v497_v4 = vsel %vm297_vm0, %v489_v0, 0.0  ;;  %v490_v5 = vmul.f32 %v1068_v1, %v969_v59  ;;  %v1070_v6 = vpop.eup %1069 }
 0x15b   : > { %498 = vadd.xlane.f32.xlu0 %v497_v4  ;;  %v1072_v7 = vpop.eup %1071  ;;  %v506_v8 = vsel %vm297_vm0, %v492_v3, 0.0  ;;  %v493_v12 = vmul.f32 %v1070_v6, %v969_v59  ;;  %v609_v3 = vsub.s32 6, %v1452_v18 }
 0x15c   : > { %v1074_v9 = vpop.eup %1073  ;;  %v500_v10 = vsel %vm297_vm0, %v490_v5, 0.0  ;;  %v494_v11 = vmul.f32 %v1072_v7, %v969_v59  ;;  %v613_v7 = vsub.s32 7, %v1452_v18 }
 0x15d   : > { %v1076_v13 = vpop.eup %1075  ;;  %v496_v15 = vmul.f32 %v1074_v9, %v969_v59  ;;  %v509_v17 = vsel %vm297_vm0, %v493_v12, 0.0 }
 0x15e   : > { %507 = vadd.xlane.f32.xlu1 %v506_v8  ;;  %v512_v14 = vsel %vm297_vm0, %v494_v11, 0.0  ;;  %v495_v19 = vmul.f32 %v1076_v13, %v969_v59 }
 0x15f   : > { %501 = vadd.xlane.f32.xlu0 %v500_v10  ;;  %v518_v20 = vsel %vm297_vm0, %v496_v15, 0.0 }
 0x160   : > { %v515_v21 = vsel %vm297_vm0, %v495_v19, 0.0 }
 0x162   : > { %513 = vadd.xlane.f32.xlu1 %v512_v14 }
 0x163   : > { %510 = vadd.xlane.f32.xlu0 %v509_v17 }
 0x166   : > { %519 = vadd.xlane.f32.xlu1 %v518_v20 }
 0x167   : > { %516 = vadd.xlane.f32.xlu0 %v515_v21 }
 0x1e7   : > { %v505_v23 = vpop.xlane.xlu1 %504 }
 0x1e8   : > { %v499_v24 = vpop.xlane.xlu0 %498  ;;  %v542_v31 = vrot.slane %v505_v23, %v1480_v25 }
 0x1e9   : > { %v534_v28 = vrot.slane %v499_v24, %v1480_v25 }
 0x1eb   : > { %v508_v26 = vpop.xlane.xlu1 %507 }
 0x1ec   : > { %v502_v27 = vpop.xlane.xlu0 %501  ;;  %v546_v32 = vrot.slane %v508_v26, %v1480_v25 }
 0x1ed   : > { %v538_v30 = vrot.slane %v502_v27, %v1480_v25 }
 0x1ef   : > { %v564_v16 = vsel %vm563_vm1, %v538_v30, %v534_v28  ;;  %v514_v33 = vpop.xlane.xlu1 %513 }
 0x1f0   : > { %v566_v34 = vsel %vm565_vm2, %v542_v31, %v564_v16  ;;  %v511_v35 = vpop.xlane.xlu0 %510  ;;  %v554_v40 = vrot.slane %v514_v33, %v1480_v25 }
 0x1f1   : > { %v568_v36 = vsel %vm567_vm3, %v546_v32, %v566_v34  ;;  %v550_v37 = vrot.slane %v511_v35, %v1480_v25 }
 0x1f3   : > { %v570_v38 = vsel %vm569_vm4, %v550_v37, %v568_v36  ;;  %v1491_v39 = vpop.xlane.xlu1 %519 }
 0x1f4   : > { %v517_v41 = vpop.xlane.xlu0 %516  ;;  %v562_v43 = vrot.slane %v1491_v39, %v1480_v25  ;;  %v572_v44 = vsel %vm571_vm5, %v554_v40, %v570_v38 }
 0x1f5   : > { %v558_v42 = vrot.slane %v517_v41, %v1480_v25 }
 0x1f7   : > { %v574_v45 = vsel %vm573_vm6, %v558_v42, %v572_v44 }
 0x1f8   : > { %v576_v46 = vsel %vm575_vm7, %v562_v43, %v574_v45 }
 0x1f9   : > { %v579_v47 = vsel %vm578_vm8, %v576_v46, -inf }
 0x1fa   : > { %580 = vmax.xlane.f32.xlu0 %v579_v47 }
 0x287   : > { %v581_v52 = vpop.xlane.xlu0 %580 }
 0x288   : > { %v586_v53 = vrot.slane %v581_v52, %v1457_v29  ;;  %v590_v54 = vrot.slane %v581_v52, %v589_v49  ;;  %v594_v55 = vrot.slane %v581_v52, %v593_v50  ;;  %v598_v57 = vrot.slane %v581_v52, %v597_v51 }
 0x289   : > { %v602_v0 = vrot.slane %v581_v52, %v601_v56  ;;  %v606_v4 = vrot.slane %v581_v52, %v605_v63  ;;  %v610_v8 = vrot.slane %v581_v52, %v609_v3  ;;  %v614_v13 = vrot.slane %v581_v52, %v613_v7 }
 0x28a   : > { %v623_v58 = vsub.f32 %v499_v24, %v586_v53  ;;  %v624_v59 = vsub.f32 %v502_v27, %v590_v54  ;;  %v625_v60 = vsub.f32 %v505_v23, %v594_v55  ;;  %v626_v1 = vsub.f32 %v508_v26, %v598_v57 }
 0x28b   : > { %v627_v5 = vsub.f32 %v511_v35, %v602_v0  ;;  %v628_v9 = vsub.f32 %v514_v33, %v606_v4  ;;  %v629_v14 = vsub.f32 %v517_v41, %v610_v8  ;;  %v630_v19 = vsub.f32 %v1491_v39, %v614_v13 }
 0x28c   : > { %v631_v61 = vmul.f32 1.442695, %v623_v58  ;;  %v633_v62 = vmul.f32 1.442695, %v624_v59  ;;  %v635_v2 = vmul.f32 1.442695, %v625_v60 }
 0x28d   : > { %v637_v6 = vmul.f32 1.442695, %v626_v1  ;;  %v639_v10 = vmul.f32 1.442695, %v627_v5  ;;  %v641_v15 = vmul.f32 1.442695, %v628_v9 }
 0x28e   : > { %1077 = vpow2.f32 %v631_v61  ;;  %v643_v20 = vmul.f32 1.442695, %v629_v14  ;;  %v645_v22 = vmul.f32 1.442695, %v630_v19 }
 0x28f   : > { %1079 = vpow2.f32 %v633_v62 }
 0x290   : > { %1081 = vpow2.f32 %v635_v2 }
 0x291   : > { %1083 = vpow2.f32 %v637_v6 }
 0x292   : > { %1085 = vpow2.f32 %v639_v10 }
 0x293   : > { %1087 = vpow2.f32 %v641_v15 }
 0x294   : > { %1089 = vpow2.f32 %v643_v20 }
 0x295   : > { %1091 = vpow2.f32 %v645_v22 }
 0x298   : > { %v1078_v11 = vpop.eup %1077 }
 0x299   : > { %v1521_v12 = vpop.eup %1079  ;;  %656 = vperm.xlu1 %1056, %v1078_v11  }
 0x29a   : > { %659 = vperm.xlu0 %1057, %v1521_v12   ;;  %v1526_v17 = vpop.eup %1081 }
 0x29b   : > { %v1530_v21 = vpop.eup %1083 }
 0x29c   : > { %v1533_v23 = vpop.eup %1085 }
 0x29d   : > { %662 = vperm.xlu1 %1056, %v1526_v17   ;;  %v1536_v24 = vpop.eup %1087 }
 0x29e   : > { %v1539_v26 = vpop.eup %1089 }
 0x29f   : > { %v1542_v27 = vpop.eup %1091 }
 0x2a1   : > { %665 = vperm.xlu1 %1056, %v1530_v21  }
 0x2a5   : > { %668 = vperm.xlu1 %1056, %v1533_v23  }
 0x2a9   : > { %671 = vperm.xlu1 %1056, %v1536_v24  }
 0x2ad   : > { %674 = vperm.xlu1 %1056, %v1539_v26  }
 0x2b1   : > { %677 = vperm.xlu1 %1056, %v1542_v27  }
 0x318   : > { %v657_v28 = vpop.permute.xlu1 %656 }
 0x319   : > { %v660_v16 = vpop.permute.xlu0 %659  ;;  %v682_v35 = vrot.slane %v657_v28, %v1480_v25 }
 0x31a   : > { %v686_v34 = vrot.slane %v660_v16, %v1480_v25 }
 0x31c   : > { %v663_v30 = vpop.permute.xlu1 %662  ;;  %v711_v40 = vsel %vm563_vm1, %v686_v34, %v682_v35 }
 0x31d   : > { %v690_v36 = vrot.slane %v663_v30, %v1480_v25 }
 0x31f   : > { %v712_v42 = vsel %vm565_vm2, %v690_v36, %v711_v40 }
 0x320   : > { %v666_v31 = vpop.permute.xlu1 %665 }
 0x321   : > { %v694_v37 = vrot.slane %v666_v31, %v1480_v25 }
 0x323   : > { %v713_v44 = vsel %vm567_vm3, %v694_v37, %v712_v42 }
 0x324   : > { %v669_v32 = vpop.permute.xlu1 %668 }
 0x325   : > { %v698_v38 = vrot.slane %v669_v32, %v1480_v25 }
 0x327   : > { %v714_v45 = vsel %vm569_vm4, %v698_v38, %v713_v44 }
 0x328   : > { %v672_v33 = vpop.permute.xlu1 %671 }
 0x329   : > { %v702_v41 = vrot.slane %v672_v33, %v1480_v25 }
 0x32b   : > { %v715_v47 = vsel %vm571_vm5, %v702_v41, %v714_v45 }
 0x32c   : > { %v675_v39 = vpop.permute.xlu1 %674 }
 0x32d   : > { %v706_v43 = vrot.slane %v675_v39, %v1480_v25 }
 0x32f   : > { %v716_v52 = vsel %vm573_vm6, %v706_v43, %v715_v47 }
 0x330   : > { %v678_v46 = vpop.permute.xlu1 %677 }
 0x331   : > { %v710_v48 = vrot.slane %v678_v46, %v1480_v25 }
 0x333   : > { %v717_v53 = vsel %vm575_vm7, %v710_v48, %v716_v52 }
 0x334   : > { %v719_v54 = vsel %vm578_vm8, %v717_v53, 0.0 }
 0x335   : > { %720 = vadd.xlane.f32.xlu1 %v719_v54 }
 0x3c2   : > { %v721_v55 = vpop.xlane.xlu1 %720 }
 0x3c3   : > { %v726_v57 = vrot.slane %v721_v55, %v1457_v29  ;;  %v730_v58 = vrot.slane %v721_v55, %v589_v49  ;;  %v734_v59 = vrot.slane %v721_v55, %v593_v50  ;;  %v738_v60 = vrot.slane %v721_v55, %v597_v51 }
 0x3c4   : > { %v742_v62 = vrot.slane %v721_v55, %v601_v56  ;;  %v746_v29 = vrot.slane %v721_v55, %v605_v63  ;;  %v750_v50 = vrot.slane %v721_v55, %v609_v3  ;;  %v754_v56 = vrot.slane %v721_v55, %v613_v7 }
 0x3c5   : > { %1093 = vrcp.f32 %v726_v57 }
 0x3c6   : > { %1095 = vrcp.f32 %v730_v58 }
 0x3c7   : > { %1097 = vrcp.f32 %v734_v59 }
 0x3c8   : > { %1099 = vrcp.f32 %v738_v60 }
 0x3c9   : > { %1101 = vrcp.f32 %v742_v62 }
 0x3ca   : > { %1103 = vrcp.f32 %v746_v29 }
 0x3cb   : > { %1105 = vrcp.f32 %v750_v50 }
 0x3cc   : > { %1107 = vrcp.f32 %v754_v56 }
 0x3cf   : > { %v1094_v61 = vpop.eup %1093 }
 0x3d0   : > { %v764_v0 = vmul.f32 %v1094_v61, %v1078_v11  ;;  %v1096_v1 = vpop.eup %1095 }
 0x3d1   : > { %v766_v49 = vmul.f32 %v1096_v1, %v1521_v12  ;;  %v1098_v2 = vpop.eup %1097 }
 0x3d2   : > { %788 = vperm.xlu0 %1057, %v764_v0   ;;  %v768_v51 = vmul.f32 %v1098_v2, %v1526_v17  ;;  %v1100_v4 = vpop.eup %1099 }
 0x3d3   : > { %v770_v5 = vmul.f32 %v1100_v4, %v1530_v21  ;;  %v1102_v6 = vpop.eup %1101 }
 0x3d4   : > { %v772_v63 = vmul.f32 %v1102_v6, %v1533_v23  ;;  %v1104_v8 = vpop.eup %1103 }
 0x3d5   : > { %v774_v3 = vmul.f32 %v1104_v8, %v1536_v24  ;;  %v1106_v9 = vpop.eup %1105 }
 0x3d6   : > { %791 = vperm.xlu0 %1057, %v766_v49   ;;  %v776_v10 = vmul.f32 %v1106_v9, %v1539_v26  ;;  %v1108_v11 = vpop.eup %1107 }
 0x3d7   : > { %v778_v18 = vmul.f32 %v1108_v11, %v1542_v27 }
 0x3da   : > { %794 = vperm.xlu0 %1057, %v768_v51  }
 0x3de   : > { %797 = vperm.xlu0 %1057, %v770_v5  }
 0x3e2   : > { %800 = vperm.xlu0 %1057, %v772_v63  }
 0x3e6   : > { %803 = vperm.xlu0 %1057, %v774_v3  }
 0x3ea   : > { %806 = vperm.xlu0 %1057, %v776_v10  }
 0x3ee   : > { %809 = vperm.xlu0 %1057, %v778_v18  }
 0x451   : > { %v789_v7 = vpop.permute.xlu0 %788 }
 0x452   : > { %v814_v21 = vrot.slane %v789_v7, %v1480_v25 }
 0x455   : > { %v792_v12 = vpop.permute.xlu0 %791 }
 0x456   : > { %v818_v19 = vrot.slane %v792_v12, %v1480_v25 }
 0x458   : > { %v843_v26 = vsel %vm563_vm1, %v818_v19, %v814_v21 }
 0x459   : > { %v795_v13 = vpop.permute.xlu0 %794 }
 0x45a   : > { %v822_v20 = vrot.slane %v795_v13, %v1480_v25 }
 0x45c   : > { %v844_v28 = vsel %vm565_vm2, %v822_v20, %v843_v26 }
 0x45d   : > { %v798_v14 = vpop.permute.xlu0 %797 }
 0x45e   : > { %v826_v22 = vrot.slane %v798_v14, %v1480_v25 }
 0x460   : > { %v845_v31 = vsel %vm567_vm3, %v826_v22, %v844_v28 }
 0x461   : > { %v801_v15 = vpop.permute.xlu0 %800 }
 0x462   : > { %v830_v23 = vrot.slane %v801_v15, %v1480_v25 }
 0x464   : > { %v846_v32 = vsel %vm569_vm4, %v830_v23, %v845_v31 }
 0x465   : > { %v804_v17 = vpop.permute.xlu0 %803 }
 0x466   : > { %v834_v27 = vrot.slane %v804_v17, %v1480_v25 }
 0x468   : > { %v847_v33 = vsel %vm571_vm5, %v834_v27, %v846_v32 }
 0x469   : > { %v807_v24 = vpop.permute.xlu0 %806 }
 0x46a   : > { %v838_v30 = vrot.slane %v807_v24, %v1480_v25 }
 0x46c   : > { %v848_v35 = vsel %vm573_vm6, %v838_v30, %v847_v33 }
 0x46d   : > { %v810_v16 = vpop.permute.xlu0 %809 }
 0x46e   : > { %v842_v34 = vrot.slane %v810_v16, %v1480_v25 }
 0x470   : > { %v849_v36 = vsel %vm575_vm7, %v842_v34, %v848_v35 }
 0x471   : > { %851 = vst.msk [vmem:[%s267_s5] sm:$0xff] %vm578_vm8, %v849_v36 }
 0x472 PF: > { %p17_p9 = scmp.ge.s32.totalorder %s1319_s25, 4   ;;  %s1633_s15 = smov %s1231_s16 }
 0x473   : > { %s1634_s16 = smov %s1235_s17  ;;  %s1635_s17 = smov %s1345_s14 }
 0x474   : > { %s1636_s18 = smov %s1319_s25  ;;  %19 = sbr.rel (!%p17_p9) target bundleno = 5 (0x5), region = 93 }
 0x47b   :  { %871 = vsyncpa [#allocation3], 1 }
 0x47c   :  { %873 = vsyncpa [#allocation3 + $0x1], 1 }
 0x47d   :  { %874 = vsyncpa [#allocation5], 1 }
 0x47e   :  { %876 = vsyncpa [#allocation5 + $0x1], 1 }

</bundles_post_ra>
